<compile_context>
chip_gen: v6e
topology: v6e:2x2x1
jax: 0.10.0
libtpu: 0.0.40
codegen_flags: <defaults>
</compile_context>

<pallas_src>
import functools

import jax
import jax.numpy as jnp
from jax import lax
from jax.experimental import pallas as pl
from jax.experimental.pallas import tpu as pltpu


# ----------------------------------------------------------------------------
# VMEM sizing helpers
# ----------------------------------------------------------------------------
def _get_vmem_capacity():
    try:
        return int(pltpu.get_tpu_info().vmem_capacity_bytes)
    except Exception:
        return 64 * 1024 * 1024          # conservative (v7x-sized) default


def _vmem_limit_bytes():
    cap = _get_vmem_capacity()
    return min((cap * 3) // 4, 96 * 1024 * 1024)


def _pick_time_chunk(T, B, H, gx_itemsize):
    """Largest divisor of T whose double-buffered gx+y window fits a VMEM budget."""
    per_step = 2 * (B * 4 * H * gx_itemsize + B * H * 4)   # 2x: double buffering
    budget = _get_vmem_capacity() // 8                      # leave ample headroom
    max_chunk = max(1, budget // max(per_step, 1))
    chunk = 1
    for cand in range(1, T + 1):
        if T % cand == 0 and cand <= max_chunk:
            chunk = cand
    return chunk


def _pick_unroll(B, H, chunk):
    """Keep live unrolled gate tiles well under the vreg file (~256 KiB)."""
    live_per_iter = B * 4 * H * 4 * 2          # gates + activations, f32
    unroll = max(1, min(8, (128 * 1024) // max(live_per_iter, 1)))
    return max(1, min(unroll, chunk))


# ----------------------------------------------------------------------------
# Input projection kernels (hoisted out of the recurrence, bf16 MXU matmuls)
# ----------------------------------------------------------------------------
def _proj_single_kernel(x_ref, w_ref, b_ref, o_ref):
    acc = jnp.dot(x_ref[...], w_ref[...], preferred_element_type=jnp.float32)
    o_ref[...] = (acc + b_ref[...]).astype(o_ref.dtype)


def _proj_single(x, w, b, *, out_dtype=jnp.bfloat16, row_tile=512, col_tile=512):
    """x:(N,K) bf16, w:(2,K,M) bf16, b:(2,1,M) f32 -> (2,N,M) per-direction gates."""
    n, k = x.shape
    n_dir, _, m = w.shape
    rt = n if n <= row_tile else row_tile
    ct = m if m <= col_tile else col_tile
    grid = (n_dir, pl.cdiv(n, rt), pl.cdiv(m, ct))
    return pl.pallas_call(
        _proj_single_kernel,
        out_shape=jax.ShapeDtypeStruct((n_dir, n, m), out_dtype),
        grid=grid,
        in_specs=[pl.BlockSpec((rt, k), lambda d, r, c: (r, 0)),
                  pl.BlockSpec((None, k, ct), lambda d, r, c: (d, 0, c)),
                  pl.BlockSpec((None, 1, ct), lambda d, r, c: (d, 0, c))],
        out_specs=pl.BlockSpec((None, rt, ct), lambda d, r, c: (d, r, c)),
        compiler_params=pltpu.CompilerParams(
            dimension_semantics=("parallel", "parallel", "parallel"),
            vmem_limit_bytes=_vmem_limit_bytes()),
    )(x, w, b)


def _proj_dual_kernel(y_ref, w_ref, b_ref, o_ref):
    # Split-K over the two direction slabs of the previous layer (no concat).
    yf = y_ref[0].astype(jnp.bfloat16)
    yb = y_ref[1].astype(jnp.bfloat16)
    acc = (jnp.dot(yf, w_ref[0], preferred_element_type=jnp.float32)
           + jnp.dot(yb, w_ref[1], preferred_element_type=jnp.float32))
    o_ref[...] = (acc + b_ref[...]).astype(o_ref.dtype)


def _proj_dual(y, w, b, *, out_dtype, row_tile=512, col_tile=512):
    """y:(2,N,H) f32, w:(D,2,H,M) bf16, b:(D,1,M) f32 -> (D,N,M)."""
    _, n, h = y.shape
    n_out, _, _, m = w.shape
    rt = n if n <= row_tile else row_tile
    ct = m if m <= col_tile else col_tile
    grid = (n_out, pl.cdiv(n, rt), pl.cdiv(m, ct))
    return pl.pallas_call(
        _proj_dual_kernel,
        out_shape=jax.ShapeDtypeStruct((n_out, n, m), out_dtype),
        grid=grid,
        in_specs=[pl.BlockSpec((2, rt, h), lambda d, r, c: (0, r, 0)),
                  pl.BlockSpec((None, 2, h, ct), lambda d, r, c: (d, 0, 0, c)),
                  pl.BlockSpec((None, 1, ct), lambda d, r, c: (d, 0, c))],
        out_specs=pl.BlockSpec((None, rt, ct), lambda d, r, c: (d, r, c)),
        compiler_params=pltpu.CompilerParams(
            dimension_semantics=("parallel", "parallel", "parallel"),
            vmem_limit_bytes=_vmem_limit_bytes()),
    )(y, w, b)


# ----------------------------------------------------------------------------
# Per-direction LSTM recurrence, streamed over time chunks
#   grid = (direction, time_chunk); direction is parallel (2 TCs on v7x),
#   time is arbitrary with h/c carried in VMEM scratch across chunks.
# ----------------------------------------------------------------------------
def _lstm_dir_kernel(gx_ref, whh_ref, h0_ref, c0_ref, y_ref, h_sc, c_sc, *,
                     hidden, chunk, flip_out, unroll):
    H = hidden
    d = pl.program_id(0)          # 0 = forward, 1 = backward
    c = pl.program_id(1)          # time-chunk step (chunks arrive in recurrence order)

    @pl.when(c == 0)
    def _():
        h_sc[...] = h0_ref[...]
        c_sc[...] = c0_ref[...]

    whh = whh_ref[...]            # (H, 4H), loop-invariant (hoisted)

    def step(t, carry):
        h, c_state = carry
        # forward walks the chunk ascending, backward descending
        t_loc = t + d * (chunk - 1 - 2 * t)
        gx = gx_ref[t_loc].astype(jnp.float32)                       # (B, 4H)
        gates = gx + jnp.dot(h, whh, preferred_element_type=jnp.float32)
        i = jax.nn.sigmoid(gates[:, 0 * H:1 * H])
        f = jax.nn.sigmoid(gates[:, 1 * H:2 * H])
        g = jnp.tanh(gates[:, 2 * H:3 * H])
        o = jax.nn.sigmoid(gates[:, 3 * H:4 * H])
        c_new = f * c_state + i * g
        h_new = o * jnp.tanh(c_new)
        # torch.flip of the final LSTM output is folded into the store index
        t_store = (chunk - 1 - t_loc) if flip_out else t_loc
        y_ref[t_store] = h_new                                       # lane-dense (B, H)
        return h_new, c_new

    h_fin, c_fin = lax.fori_loop(0, chunk, step, (h_sc[...], c_sc[...]),
                                 unroll=unroll)
    h_sc[...] = h_fin
    c_sc[...] = c_fin


def _run_lstm_layer(gx, whh, h0, c0, *, hidden, flip_out):
    """gx:(2,T,B,4H) bf16, whh:(2,H,4H) f32, h0/c0:(2,B,H) f32 -> y:(2,T,B,H) f32."""
    _, T, B, _ = gx.shape
    H = hidden
    chunk = _pick_time_chunk(T, B, H, jnp.dtype(gx.dtype).itemsize)
    n_chunks = T // chunk
    unroll = _pick_unroll(B, H, chunk)

    kernel = functools.partial(_lstm_dir_kernel, hidden=H, chunk=chunk,
                               flip_out=flip_out, unroll=unroll)

    # forward reads chunk c, backward reads chunk (n_chunks-1-c)
    def gx_map(d, c):
        return (d, c + d * (n_chunks - 1 - 2 * c), 0, 0)

    if flip_out:
        def y_map(d, c):
            return (d, (n_chunks - 1 - c) - d * (n_chunks - 1 - 2 * c), 0, 0)
    else:
        y_map = gx_map

    # TODO(synk): further win — fuse the per-chunk input projection into this
    # streamed recurrence (emit_pipeline / manual DMA) to avoid the gx HBM
    # round-trip entirely.
    return pl.pallas_call(
        kernel,
        out_shape=jax.ShapeDtypeStruct((2, T, B, H), jnp.float32),
        grid=(2, n_chunks),
        in_specs=[pl.BlockSpec((None, chunk, B, 4 * H), gx_map),
                  pl.BlockSpec((None, H, 4 * H), lambda d, c: (d, 0, 0)),
                  pl.BlockSpec((None, B, H), lambda d, c: (d, 0, 0)),
                  pl.BlockSpec((None, B, H), lambda d, c: (d, 0, 0))],
        out_specs=pl.BlockSpec((None, chunk, B, H), y_map),
        scratch_shapes=[pltpu.VMEM((B, H), jnp.float32),
                        pltpu.VMEM((B, H), jnp.float32)],
        compiler_params=pltpu.CompilerParams(
            dimension_semantics=("parallel", "arbitrary"),
            vmem_limit_bytes=_vmem_limit_bytes()),
    )(gx, whh, h0, c0)


# ----------------------------------------------------------------------------
# Forward pass (mirrors DecoderRNN.forward, eval mode)
# ----------------------------------------------------------------------------
def decoder_rnn_forward(params, x, h0, c0):
    """x: (B, T, input_dim) batch-first; h0/c0: (n_layers*2, B, H)."""
    B, T, D_in = x.shape
    H = params["hidden_dims"]
    n_layers = params["n_layers"]

    # pad batch to a multiple of the sublane width (>= 8)
    B_pad = max(8, ((B + 7) // 8) * 8)
    if B_pad != B:
        x = jnp.pad(x, ((0, B_pad - B), (0, 0), (0, 0)))
        h0 = jnp.pad(h0, ((0, 0), (0, B_pad - B), (0, 0)))
        c0 = jnp.pad(c0, ((0, 0), (0, B_pad - B), (0, 0)))

    N = T * B_pad
    # time-major, row-flattened; bf16 for the MXU projection
    x_tm = jnp.transpose(x, (1, 0, 2)).reshape(N, D_in).astype(jnp.bfloat16)

    y = None
    for l in range(n_layers):
        lp = params["lstm"][l]
        if l == 0:
            gx = _proj_single(x_tm, lp["wih"], lp["bias"])               # (2, N, 4H) bf16
        else:
            gx = _proj_dual(y.reshape(2, N, H), lp["wih"], lp["bias"],
                            out_dtype=jnp.bfloat16)                      # (2, N, 4H) bf16
        gx = gx.reshape(2, T, B_pad, 4 * H)
        y = _run_lstm_layer(gx, lp["whh"], h0[2 * l:2 * l + 2],
                            c0[2 * l:2 * l + 2], hidden=H,
                            flip_out=(l == n_layers - 1))                # (2, T, B_pad, H)
        # TODO(synk): inter-layer dropout (training only) is not applied.

    # final linear decoder; y already equals flip(lstm_out, time), split by direction
    wlin, blin = params["linear"]
    dec = _proj_dual(y.reshape(2, N, H), wlin, blin, out_dtype=jnp.float32)  # (1, N, D_in)
    dec = dec.reshape(T, B_pad, D_in)
    return jnp.transpose(dec, (1, 0, 2))[:B]


# ----------------------------------------------------------------------------
# Parameter init (PyTorch layout) and conversion to kernel layout
# ----------------------------------------------------------------------------
def init_raw_params(key, input_dim, hidden, n_layers):
    lstm = []
    for l in range(n_layers):
        d_in = input_dim if l == 0 else 2 * hidden
        for _direction in range(2):
            key, k1, k2, k3, k4 = jax.random.split(key, 5)
            w_ih = jax.random.uniform(k1, (4 * hidden, d_in), jnp.float32,
                                      minval=-0.1, maxval=0.1)
            w_hh = jax.random.uniform(k2, (4 * hidden, hidden), jnp.float32,
                                      minval=-0.1, maxval=0.1)
            b_ih = jax.random.uniform(k3, (4 * hidden,), jnp.float32,
                                      minval=-0.1, maxval=0.1)
            b_hh = jax.random.uniform(k4, (4 * hidden,), jnp.float32,
                                      minval=-0.1, maxval=0.1)
            lstm.append((w_ih, w_hh, b_ih, b_hh))
    key, kw = jax.random.split(key)
    w_lin = jax.random.uniform(kw, (input_dim, 2 * hidden), jnp.float32,
                               minval=-0.1, maxval=0.1)
    b_lin = jnp.zeros((input_dim,), jnp.float32)
    return {"hidden_dims": hidden, "n_layers": n_layers,
            "lstm": lstm, "linear": (w_lin, b_lin)}


def prepare_params(raw):
    """Build direction-major kernel layouts (bf16 MXU weights, f32 whh/bias)."""
    H = raw["hidden_dims"]
    n_layers = raw["n_layers"]
    layers = []
    for l in range(n_layers):
        per_dir = [raw["lstm"][2 * l], raw["lstm"][2 * l + 1]]
        whh = jnp.stack([p[1].T for p in per_dir]).astype(jnp.float32)   # (2, H, 4H)
        bias = jnp.stack([(p[2] + p[3])[None, :] for p in per_dir])      # (2, 1, 4H)
        if l == 0:
            wih = jnp.stack([p[0].T for p in per_dir])                   # (2, D_in, 4H)
        else:
            # split the (4H, 2H) input weights along K into fwd/bwd halves
            wih = jnp.stack([jnp.stack([p[0][:, :H].T, p[0][:, H:].T])
                             for p in per_dir])                          # (2, 2, H, 4H)
        layers.append({"wih": wih.astype(jnp.bfloat16), "whh": whh,
                       "bias": bias.astype(jnp.float32)})

    w_lin, b_lin = raw["linear"]                                         # (D_in, 2H), (D_in,)
    wlin = jnp.stack([w_lin[:, :H].T, w_lin[:, H:].T])[None]             # (1, 2, H, D_in)
    blin = b_lin[None, None, :]                                          # (1, 1, D_in)
    return {"hidden_dims": H, "n_layers": n_layers, "lstm": layers,
            "linear": (wlin.astype(jnp.bfloat16), blin.astype(jnp.float32))}


# ----------------------------------------------------------------------------
# Pure-JAX f32 reference (PyTorch-layout math, lax.scan) for correctness check
# ----------------------------------------------------------------------------
def _ref_forward(raw, x, h0, c0):
    H = raw["hidden_dims"]
    n_layers = raw["n_layers"]
    B, T, D_in = x.shape
    layer_in = jnp.transpose(x, (1, 0, 2))

    def run_dir(x_tm, w_ih, w_hh, b_ih, b_hh, h_init, c_init):
        wt_ih, wt_hh = w_ih.T, w_hh.T
        b = (b_ih + b_hh)[None, :]

        def step(carry, x_t):
            h, c = carry
            gates = x_t @ wt_ih + h @ wt_hh + b
            i = jax.nn.sigmoid(gates[:, :H])
            f = jax.nn.sigmoid(gates[:, H:2 * H])
            g = jnp.tanh(gates[:, 2 * H:3 * H])
            o = jax.nn.sigmoid(gates[:, 3 * H:])
            c = f * c + i * g
            h = o * jnp.tanh(c)
            return (h, c), h

        _, ys = lax.scan(step, (h_init, c_init), x_tm)
        return ys

    for l in range(n_layers):
        outs = []
        for d in range(2):
            idx = 2 * l + d
            w_ih, w_hh, b_ih, b_hh = raw["lstm"][idx]
            xi = layer_in if d == 0 else jnp.flip(layer_in, axis=0)
            ys = run_dir(xi, w_ih, w_hh, b_ih, b_hh, h0[idx], c0[idx])
            if d == 1:
                ys = jnp.flip(ys, axis=0)
            outs.append(ys)
        layer_in = jnp.concatenate(outs, axis=-1)

    out = jnp.flip(layer_in, axis=0)
    w_lin, b_lin = raw["linear"]
    dec = out.reshape(T * B, 2 * H) @ w_lin.T + b_lin[None, :]
    return jnp.transpose(dec.reshape(T, B, D_in), (1, 0, 2))


# ----------------------------------------------------------------------------
if __name__ == "__main__":
    B, T = 2, 8
    INPUT_DIM, HIDDEN, N_LAYERS = 16, 32, 2

    key = jax.random.PRNGKey(0)
    kp, kx, kh, kc = jax.random.split(key, 4)

    raw = init_raw_params(kp, INPUT_DIM, HIDDEN, N_LAYERS)
    params = prepare_params(raw)

    x = jax.random.normal(kx, (B, T, INPUT_DIM), jnp.float32)
    h0 = jax.random.normal(kh, (N_LAYERS * 2, B, HIDDEN), jnp.float32)
    c0 = jax.random.normal(kc, (N_LAYERS * 2, B, HIDDEN), jnp.float32)

    out = jax.block_until_ready(decoder_rnn_forward(params, x, h0, c0))
    ref = jax.block_until_ready(_ref_forward(raw, x, h0, c0))

    assert out.shape == (B, T, INPUT_DIM)
    # bf16 MXU inputs + bf16 gx storage -> tolerance loosened vs full-f32 ref
    err = float(jnp.max(jnp.abs(out - ref)))
    assert jnp.allclose(out, ref, atol=5e-2, rtol=5e-2), err

    print("KERNEL_OK")
</pallas_src>

<mosaic_0001>
module attributes {stable_mosaic.version = 11 : i64} {
  func.func @_proj_single_kernel(%arg0: i32, %arg1: i32, %arg2: i32, %arg3: memref<64x16xbf16, #tpu.memory_space<vmem>>, %arg4: memref<1x16x128xbf16, #tpu.memory_space<vmem>>, %arg5: memref<1x1x128xf32, #tpu.memory_space<vmem>>, %arg6: memref<1x64x128xbf16, #tpu.memory_space<vmem>>) attributes {dimension_semantics = [#tpu.dimension_semantics<parallel>, #tpu.dimension_semantics<parallel>, #tpu.dimension_semantics<parallel>], iteration_bounds = array<i64: 2, 1, 1>, scalar_prefetch = 0 : i64, scratch_operands = 0 : i64, tpu.core_type = #tpu.core_type<tc>, window_params = [{transform_indices = @transform_0, window_bounds = array<i64: 64, 16>}, {transform_indices = @transform_1, window_bounds = array<i64: 1, 16, 128>}, {transform_indices = @transform_2, window_bounds = array<i64: 1, 1, 128>}, {transform_indices = @transform_3, window_bounds = array<i64: 1, 64, 128>}]} {
    %c0 = arith.constant 0 : index
    %c0_0 = arith.constant 0 : index
    %0 = vector.load %arg3[%c0, %c0_0] : memref<64x16xbf16, #tpu.memory_space<vmem>>, vector<64x16xbf16>
    %c0_1 = arith.constant 0 : index
    %c0_2 = arith.constant 0 : index
    %c0_3 = arith.constant 0 : index
    %1 = vector.load %arg4[%c0_1, %c0_2, %c0_3] : memref<1x16x128xbf16, #tpu.memory_space<vmem>>, vector<1x16x128xbf16>
    %2 = vector.shape_cast %1 : vector<1x16x128xbf16> to vector<16x128xbf16>
    %cst = arith.constant dense<0.000000e+00> : vector<64x128xf32>
    %3 = tpu.matmul %0, %2, %cst {dimension_numbers = #tpu.dot_dimension_numbers<[1], [0], [0], [1], [0, 0, 1, 1], [], []>} : vector<64x16xbf16>, vector<16x128xbf16>, vector<64x128xf32> -> vector<64x128xf32>
    %c0_4 = arith.constant 0 : index
    %c0_5 = arith.constant 0 : index
    %c0_6 = arith.constant 0 : index
    %4 = vector.load %arg5[%c0_4, %c0_5, %c0_6] : memref<1x1x128xf32, #tpu.memory_space<vmem>>, vector<1x1x128xf32>
    %5 = vector.shape_cast %4 : vector<1x1x128xf32> to vector<1x128xf32>
    %6 = vector.broadcast %5 : vector<1x128xf32> to vector<64x128xf32>
    %7 = arith.addf %3, %6 : vector<64x128xf32>
    %8 = arith.truncf %7 : vector<64x128xf32> to vector<64x128xbf16>
    %c0_7 = arith.constant 0 : index
    %c0_8 = arith.constant 0 : index
    %c0_9 = arith.constant 0 : index
    %9 = vector.load %arg6[%c0_7, %c0_8, %c0_9] : memref<1x64x128xbf16, #tpu.memory_space<vmem>>, vector<1x64x128xbf16>
    %10 = vector.shape_cast %9 : vector<1x64x128xbf16> to vector<64x128xbf16>
    %11 = vector.shape_cast %8 : vector<64x128xbf16> to vector<1x64x128xbf16>
    tpu.vector_store %arg6[%c0_7, %c0_8, %c0_9], %11 {strides = array<i32>} : memref<1x64x128xbf16, #tpu.memory_space<vmem>>, vector<1x64x128xbf16>,
    return
  }
  func.func @transform_0(%arg0: i32, %arg1: i32, %arg2: i32) -> (i32, i32) {
    %c0_i32 = arith.constant 0 : i32
    %c0_i32_0 = arith.constant 0 : i32
    return %arg1, %c0_i32 : i32, i32
  }
  func.func @transform_1(%arg0: i32, %arg1: i32, %arg2: i32) -> (i32, i32, i32) {
    %c0_i32 = arith.constant 0 : i32
    %c0_i32_0 = arith.constant 0 : i32
    return %arg0, %c0_i32, %arg2 : i32, i32, i32
  }
  func.func @transform_2(%arg0: i32, %arg1: i32, %arg2: i32) -> (i32, i32, i32) {
    %c0_i32 = arith.constant 0 : i32
    %c0_i32_0 = arith.constant 0 : i32
    return %arg0, %c0_i32, %arg2 : i32, i32, i32
  }
  func.func @transform_3(%arg0: i32, %arg1: i32, %arg2: i32) -> (i32, i32, i32) {
    %c0_i32 = arith.constant 0 : i32
    return %arg0, %arg1, %arg2 : i32, i32, i32
  }
}

</mosaic_0001>

<bundles_post_ra>
// kernel: tpu_custom_call.1
= control target key start
LH: loop header
LB: loop body
LE: loop exit
PB: predicated region body
PF: predicated region fallthrough
CT: control target
= control target key end

     0   :  { %8 = vsyncpa [#allocation3], 0  ;;  %s918_s0 = inlined_call_operand.vmem [shape: bf16[64,16], index: 0, kind: input, shape index: {}]   ;;  %s919_s1 = inlined_call_operand.vmem [shape: bf16[2,16,128], index: 1, kind: input, shape index: {}]   ;;  %s920_s2 = inlined_call_operand.vmem [shape: f32[2,1,128], index: 2, kind: input, shape index: {}]   ;;  %s921_s3 = inlined_call_operand.hbm [shape: bf16[2,64,128], index: 3, kind: output, shape index: {}]  }
   0x1   :  { %10 = vsyncpa [#allocation3 + $0x1], 0  ;;  %s785_s12 = smov 0   ;;  %s787_s13 = smov 0  }
   0x2   :  { %s789_s14 = smov 0   ;;  %s791_s15 = smov 0  }
   0x3   :  { %s793_s16 = smov 0   ;;  %s795_s17 = smov 0  }
   0x4 LB: > { %s540_s18 = sadd.s32 4294967295, %s760_s17   ;;  %s541_s19 = sadd.s32 4294967294, %s760_s17   ;;  %s760_s17 = sphi %s795_s17, %s16_s17   ;;  %s756_s16 = sphi %s793_s16, %s928_s16   ;;  %s752_s15 = sphi %s791_s15, %s927_s15   ;;  %s748_s14 = sphi %s789_s14, %s926_s14   ;;  %s744_s13 = sphi %s787_s13, %s925_s13   ;;  %s740_s12 = sphi %s785_s12, %s924_s12  }
   0x5   : > { %s35_s20 = sadd.s32 1, %s756_s16  ;;  %s128_s21 = sadd.s32 1, %s748_s14 }
   0x6   : > { %p37_p0 = scmp.ge.s32.totalorder %s35_s20, 2  ;;  %p138_p1 = scmp.ne.s32.totalorder %s748_s14, %s744_s13 }
   0x7   : > { %p139_p2 = scmp.eq.s32.totalorder %s540_s18, 1  ;;  %p144_p3 = scmp.ne.s32.totalorder %s744_s13, %s740_s12 }
   0x8   : > { %s930_s20 = smov (%p37_p0, %s35_s20), 0  ;;  %p145_p5 = scmp.eq.s32.totalorder %s541_s19, 1 }
   0x9   : > { %p825_p4 = por %p139_p2, %p138_p1  ;;  %s121_s23 = ssub.s32 %s756_s16, %s930_s20 }
   0xa   : > { %p545_p6 = scmp.ge.s32.totalorder %s760_s17, 1  ;;  %p126_p7 = scmp.eq.s32.totalorder %s121_s23, 0 }
   0xb   : > { %p832_p8 = por %p145_p5, %p144_p3  ;;  %p192_p9 = scmp.lt.s32.totalorder %s760_s17, 3 }
   0xc   : > { %s838_s25 = scalar_select %p126_p7, %s748_s14, %s128_s21  }
   0xd   : > { %p193_p10 = pnand %p545_p6, %p192_p9 }
   0xe   : > { %p236_p11 = scmp.lt.s32.totalorder (!%p193_p10), %s752_s15, 1  ;;  %s227_s18 = sand.u32 (!%p193_p10), 1, %s744_s13  }
   0xf   : > { %196 = sbr.rel (%p193_p10) target bundleno = 246 (0xf6), region = 32  ;;  %s546_s26 = sshll.u32 (!%p193_p10), %s227_s18, 5 }
  0x10   : > { %s229_s27 = scalar_lea.vmem (!%p193_p10), [#allocation2], %s546_s26  ;;  %s581_s29 = sshll.u32 (!%p193_p10), %s752_s15, 9 }
  0x11   : > { %s430_s28 = sshll.u32 (!%p193_p10), %s229_s27, 4  ;;  %s869_s5 = scalar_lea.hbm (!%p193_p10), %s921_s3, %s581_s29  ;;  %s864_s28 = int_to_ptr.vmem [resolvable:$true] %s430_s28 }
  0x12   : > { %s684_s6 = scalar_lea.vmem (!%p193_p10), %s864_s28, 512 }
  0x13   : > { %p685_p12 = scmp.ne.s32.totalorder (!%p193_p10), %s864_s28, %s684_s6 }
  0x14   : > { %v680_v0 = vld [vmem:[%s918_s0] sm:$0xff]   ;;  %vm295_vm0 = vcmask 130048   ;;  %v681_v1 = vld [vmem:[%s918_s0 + $0x10] sm:$0xff]   ;;  %s237_s30 = scalar_select %p236_p11, %s752_s15, 1  ;;  %v682_v3 = vld [vmem:[%s918_s0 + $0x8] sm:$0xff]  }
  0x15   : > { %612 = vmatprep.mubr.msk.bf16.mxu0 %vm295_vm0, %v680_v0  ;;  %616 = vmatprep.mubr.msk.bf16.mxu1 %vm295_vm0, %v681_v1  ;;  %v683_v4 = vld [vmem:[%s918_s0 + $0x18] sm:$0xff]   ;;  %s873_s15 = scalar_lea.sflag [#allocation3], %s227_s18  ;;  %p686_p13 = pnand %p685_p12, %p825_p4 }
  0x16   : > { %s572_s4 = sshll.u32 %s237_s30, 3  ;;  %s249_s23 = scalar_lea.vmem %s920_s2, %s237_s30 }
  0x17   : > { %s243_s7 = scalar_lea.vmem %s919_s1, %s572_s4  ;;  %v549_v7 = vld [vmem:[%s249_s23] ss:$0 sm:$0xff]  ;;  %p687_p0 = pneg %p686_p13 }
  0x18   : > { %v679_v2 = vld [vmem:[%s243_s7] sm:$0xff]   ;;  %s762_s7 = smov [#allocation2]  }
  0x19   : > { %610 = vmatprep.subr.bf16.mxu0 %v679_v2  ;;  %620 = vmatprep.subr.bf16.mxu1 %v679_v2  ;;  %s688_s8 = sshll.u32 %s762_s7, 4  ;;  %s689_s8 = int_to_ptr.vmem [resolvable:$false] %s688_s8 }
  0x1a   : > { %611 = vmatpush3.bf16.msra.mxu0 %v679_v2  ;;  %621 = vmatpush3.bf16.msra.mxu1 %v679_v2  ;;  %s690_s9 = scalar_lea.vmem %s689_s8, 1024  ;;  %p691_p1 = scmp.lt.s32.totalorder %s864_s28, %s689_s8 }
  0x1b   : > { %p692_p2 = scmp.lt.s32.totalorder %s690_s9, %s684_s6 }
  0x1d   : > { %613 = vmatmul.mubr.msk.bf16.vlgmr.msra.gmra.mxu0 %vm295_vm0, %v682_v3  ;;  %617 = vmatmul.mubr.msk.bf16.vlgmr.msra.gmra.mxu1 %vm295_vm0, %v683_v4  ;;  %p693_p3 = por %p692_p2, %p691_p1 }
  0x1f   : > { %p694_p5 = pnand %p693_p3, %p687_p0 }
  0xdd   : > { %v614_v5 = vpop.f32.mrf.mxu0  ;;  %v618_v6 = vpop.f32.mrf.mxu1 }
  0xde   : > { %v351_v12 = vadd.f32 %v614_v5, %v549_v7  ;;  %v367_v13 = vadd.f32 %v618_v6, %v549_v7 }
  0xdf   : > { %v342_v8 = vpop.f32.mrf.mxu0  ;;  %v358_v9 = vpop.f32.mrf.mxu1 }
  0xe0   : > { %v343_v16 = vadd.f32 %v549_v7, %v342_v8  ;;  %v359_v17 = vadd.f32 %v549_v7, %v358_v9 }
  0xe1   : > { %v615_v10 = vpop.f32.mrf.mxu0  ;;  %v619_v11 = vpop.f32.mrf.mxu1 }
  0xe2   : > { %v354_v14 = vadd.f32 %v615_v10, %v549_v7  ;;  %v370_v15 = vadd.f32 %v619_v11, %v549_v7 }
  0xe3   : > { %v345_v18 = vpop.f32.mrf.mxu0  ;;  %v361_v19 = vpop.f32.mrf.mxu1 }
  0xe4   : > { %v590_v20 = vpack.c.bf16 %v354_v14, %v351_v12  ;;  %v600_v21 = vpack.c.bf16 %v370_v15, %v367_v13  ;;  %v346_v22 = vadd.f32 %v549_v7, %v345_v18  ;;  %v362_v23 = vadd.f32 %v549_v7, %v361_v19 }
  0xe6   : > { %602 = vst [vmem:[%s229_s27 + $0x8] sm:$0xff] %v590_v20   ;;  %604 = vst [vmem:[%s229_s27 + $0x18] sm:$0xff] %v600_v21   ;;  %v585_v24 = vpack.c.bf16 %v346_v22, %v343_v16  ;;  %v595_v25 = vpack.c.bf16 %v362_v23, %v359_v17 }
  0xe8   : > { %586 = vst [vmem:[%s229_s27] sm:$0xff] %v585_v24   ;;  %603 = vst [vmem:[%s229_s27 + $0x10] sm:$0xff] %v595_v25  }
  0xe9   : > { %697 = shalt.err (!%p694_p5)
}
  0xea   : > { %s698_s10 = scalar_lea.hbm %s869_s5, 512  ;;  %s702_s19 = scalar_lea.hbm %s921_s3, 1024 }
  0xeb   : > { %p699_p6 = scmp.ne.s32.totalorder %s869_s5, %s698_s10  ;;  %p703_p10 = scmp.lt.s32.totalorder %s869_s5, %s921_s3 }
  0xec   : > { %p704_p11 = scmp.lt.s32.totalorder %s702_s19, %s698_s10 }
  0xed   : > { %p700_p7 = pnand %p699_p6, %p825_p4 }
  0xee   : > { %p705_p12 = por %p704_p11, %p703_p10 }
  0xef   : > { %p701_p9 = pneg %p700_p7 }
  0xf1   : > { %p706_p13 = pnand %p705_p12, %p701_p9 }
  0xf3   : > { %709 = shalt.err (!%p706_p13)
}
  0xf4   : > { %s763_s26 = smov 64   ;;  %s764_s27 = smov 4  }
  0xf5   : > { %622 = dma.vmem_to_hbm [thread:$0]  (%p825_p4), %s864_s28, 512, %s869_s5, %s873_s15, %s763_s26, %s763_s26, %s764_s27  }
  0xf6 PF: > { %p628_p0 = scmp.ge.s32.totalorder %s760_s17, 2  ;;  %s445_s29 = sand.u32 1, %s740_s12  }
  0xf7   : > { %s446_s30 = scalar_lea.sflag [#allocation3], %s445_s29 }
  0xf8   : > { %p625_p1 = pnand %p628_p0, %p832_p8 }
  0xfa   : > { %p626_p2 = pneg %p625_p1 }
  0xfc   : > { %735 = dma.done.wait (%p626_p2), %s446_s30, 512  }
  0xfd   : > { %737 = vsyncadd (%p626_p2), %s446_s30, 4294966784  ;;  %s16_s17 = sadd.s32 1, %s760_s17   ;;  %s924_s12 = smov %s744_s13 }
  0xfe   : > { %p13_p3 = scmp.ge.s32.totalorder %s16_s17, 4   ;;  %s925_s13 = smov %s748_s14 }
  0xff   : > { %s926_s14 = smov %s838_s25  ;;  %s927_s15 = smov %s756_s16 }
 0x100   : > { %s928_s16 = smov %s930_s20  ;;  %15 = sbr.rel (!%p13_p3) target bundleno = 4 (0x4), region = 73 }
 0x105   :  { %451 = vsyncpa [#allocation3], 1 }
 0x106   :  { %453 = vsyncpa [#allocation3 + $0x1], 1 }

</bundles_post_ra>
